<compile_context>
chip_gen: v7x
topology: tpu7x:2x2x1
jax: 0.10.0
libtpu: 0.0.40
codegen_flags: <defaults>
</compile_context>

<pallas_src>
import jax
import jax.numpy as jnp
from jax.experimental import pallas as pl
from jax.experimental.pallas import tpu as pltpu


def _simple_model_kernel(x_ref, w_ref, b_ref, o_ref):
    """x_ref: (TB, D) VMEM; w_ref: (1, D) VMEM; b_ref: (1,) SMEM; o_ref: (TB, 1) VMEM."""
    # Upcast after load (no-op for f32 inputs, frees HBM bytes for bf16 inputs).
    x = x_ref[...].astype(jnp.float32)
    w = w_ref[...].astype(jnp.float32)
    # VPU: (1, D) weight row broadcast over TB sublanes.
    prod = x * w
    # XLU: lane reduce over the contraction axis D -> (TB, 1); add scalar bias.
    logits = jnp.sum(prod, axis=-1, keepdims=True) + b_ref[0]
    # EUP tanh form of sigmoid (exact, no overflow path, no VALU divide).
    o_ref[...] = 0.5 * (jnp.tanh(0.5 * logits) + 1.0)


def _pick_batch_tile(batch, input_dim, itemsize):
    """~1 MiB input blocks (double-buffered by Pallas), sublane-aligned."""
    target_bytes = 1 << 20
    tb = max(8, target_bytes // max(1, input_dim * itemsize))
    tb = (tb // 8) * 8
    tb = min(tb, ((batch + 7) // 8) * 8)
    return max(8, tb)


def simple_model_forward(x, linear_w, linear_b):
    """x: (B, D); linear_w: (O, D); linear_b: (O,).  Returns sigmoid(x @ W^T + b), shape (B, O)."""
    B, D = x.shape
    O = linear_w.shape[0]
    # Kernel is specialized for the module's binary-classification head.
    # TODO(synk): output_dim > 1 would need an MXU matmul path; spec default is 1.
    assert O == 1, "kernel is specialized for output_dim == 1"

    w_row = linear_w               # (1, D) row, used as-is (no reshape/transpose)
    b1 = linear_b.reshape(1)       # scalar bias for SMEM
    out_shape = jax.ShapeDtypeStruct((B, 1), jnp.float32)

    itemsize = jnp.dtype(x.dtype).itemsize
    small = B * D * itemsize <= (4 << 20)  # whole problem comfortably VMEM-resident

    if small:
        # Single program: full-array blocks (satisfy the (8,128) rule by matching
        # full dims), no grid/per-step overhead, no DMA pipelining needed.
        out = pl.pallas_call(
            _simple_model_kernel,
            out_shape=out_shape,
            grid_spec=pl.GridSpec(
                grid=(),
                in_specs=[
                    pl.BlockSpec((B, D), lambda: (0, 0)),
                    pl.BlockSpec((1, D), lambda: (0, 0)),
                    pl.BlockSpec(memory_space=pltpu.MemorySpace.SMEM),
                ],
                out_specs=pl.BlockSpec((B, 1), lambda: (0, 0)),
            ),
        )(x, w_row, b1)
    else:
        # Scaled path: tile batch along sublanes; BlockSpec double-buffers the
        # x DMA; weights/bias are grid-invariant.  Edge block writes are masked
        # by Pallas, so B need not divide TB.
        TB = _pick_batch_tile(B, D, itemsize)
        out = pl.pallas_call(
            _simple_model_kernel,
            out_shape=out_shape,
            grid_spec=pl.GridSpec(
                grid=(pl.cdiv(B, TB),),
                in_specs=[
                    pl.BlockSpec((TB, D), lambda i: (i, 0)),
                    pl.BlockSpec((1, D), lambda i: (0, 0)),
                    pl.BlockSpec(memory_space=pltpu.MemorySpace.SMEM),
                ],
                out_specs=pl.BlockSpec((TB, 1), lambda i: (i, 0)),
            ),
            compiler_params=pltpu.CompilerParams(
                dimension_semantics=("parallel",),  # shard across v7x's 2 TCs
            ),
        )(x, w_row, b1)

    return out  # (B, 1) == (B, O)


if __name__ == "__main__":
    # Small shapes consistent with the module: batch=8, input_dim=32, output_dim=1.
    input_dim = 32
    output_dim = 1
    batch = 8

    key = jax.random.PRNGKey(0)
    kx, kw, kb = jax.random.split(key, 3)

    # PyTorch nn.Linear default init: uniform(-1/sqrt(in), 1/sqrt(in)).
    bound = 1.0 / (input_dim ** 0.5)
    linear_w = jax.random.uniform(kw, (output_dim, input_dim), jnp.float32, -bound, bound)
    linear_b = jax.random.uniform(kb, (output_dim,), jnp.float32, -bound, bound)
    x = jax.random.normal(kx, (batch, input_dim), jnp.float32)

    out = simple_model_forward(x, linear_w, linear_b)
    out = jax.block_until_ready(out)

    # Pure-JAX reference check.
    ref = jax.nn.sigmoid(x @ linear_w.T + linear_b)
    assert out.shape == (batch, output_dim)
    assert jnp.allclose(out, ref, atol=1e-5, rtol=1e-5)

    print("KERNEL_OK")
</pallas_src>

<mosaic_0001>
module attributes {stable_mosaic.version = 11 : i64} {
  func.func @_simple_model_kernel(%arg0: memref<8x32xf32, #tpu.memory_space<vmem>>, %arg1: memref<1x32xf32, #tpu.memory_space<vmem>>, %arg2: memref<1xf32, #tpu.memory_space<smem>>, %arg3: memref<8x1xf32, #tpu.memory_space<vmem>>) attributes {dimension_semantics = [], scalar_prefetch = 0 : i64, scratch_operands = 0 : i64, tpu.core_type = #tpu.core_type<tc>} {
    %c0 = arith.constant 0 : index
    %c0_0 = arith.constant 0 : index
    %0 = vector.load %arg0[%c0, %c0_0] : memref<8x32xf32, #tpu.memory_space<vmem>>, vector<8x32xf32>
    %c0_1 = arith.constant 0 : index
    %c0_2 = arith.constant 0 : index
    %1 = vector.load %arg1[%c0_1, %c0_2] : memref<1x32xf32, #tpu.memory_space<vmem>>, vector<1x32xf32>
    %2 = vector.broadcast %1 : vector<1x32xf32> to vector<8x32xf32>
    %3 = arith.mulf %0, %2 : vector<8x32xf32>
    %cst = arith.constant dense<0.000000e+00> : vector<8xf32>
    %4 = vector.multi_reduction <add>, %3, %cst [1] : vector<8x32xf32> to vector<8xf32>
    %5 = vector.shape_cast %4 : vector<8xf32> to vector<8x1xf32>
    %c0_3 = arith.constant 0 : index
    %6 = memref.load %arg2[%c0_3] : memref<1xf32, #tpu.memory_space<smem>>
    %7 = vector.broadcast %6 : f32 to vector<8x1xf32>
    %8 = arith.addf %5, %7 : vector<8x1xf32>
    %cst_4 = arith.constant 5.000000e-01 : f32
    %9 = vector.broadcast %cst_4 : f32 to vector<8x1xf32>
    %10 = arith.mulf %9, %8 : vector<8x1xf32>
    %11 = math.tanh %10 : vector<8x1xf32>
    %cst_5 = arith.constant 1.000000e+00 : f32
    %12 = vector.broadcast %cst_5 : f32 to vector<8x1xf32>
    %13 = arith.addf %11, %12 : vector<8x1xf32>
    %cst_6 = arith.constant 5.000000e-01 : f32
    %14 = vector.broadcast %cst_6 : f32 to vector<8x1xf32>
    %15 = arith.mulf %14, %13 : vector<8x1xf32>
    %c0_7 = arith.constant 0 : index
    %c0_8 = arith.constant 0 : index
    %16 = vector.load %arg3[%c0_7, %c0_8] : memref<8x1xf32, #tpu.memory_space<vmem>>, vector<8x1xf32>
    tpu.vector_store %arg3[%c0_7, %c0_8], %15 {strides = array<i32>} : memref<8x1xf32, #tpu.memory_space<vmem>>, vector<8x1xf32>,
    return
  }
}

</mosaic_0001>

<bundles_post_ra>
// kernel: tpu_custom_call.1
= control target key start
LH: loop header
LB: loop body
LE: loop exit
PB: predicated region body
PF: predicated region fallthrough
CT: control target
= control target key end

     0   :  { %9 = vsyncpa [#allocation4], 0  ;;  %s82_s12 = smov [#allocation3]   ;;  %s124_s0 = inlined_call_operand.hbm [shape: f32[8,32], index: 0, kind: input, shape index: {}]   ;;  %s125_s1 = inlined_call_operand.vmem [shape: f32[1,32], index: 1, kind: input, shape index: {}]   ;;  %s126_s2 = inlined_call_operand.<no memory space> [shape: f32[1], index: 2, kind: input, shape index: {}]   ;;  %s127_s3 = inlined_call_operand.vmem [shape: f32[8,1], index: 3, kind: output, shape index: {}]  }
   0x1   :  { %s16_s13 = sshll.u32 %s82_s12, 4  ;;  %s58_s16 = scalar_lea.hbm %s124_s0, 128  ;;  %s17_s13 = int_to_ptr.vmem [resolvable:$true] %s16_s13 }
   0x2   :  { %p59_p0 = scmp.ne.s32.totalorder %s124_s0, %s58_s16  ;;  %p62_p1 = scmp.lt.u32.totalorder %s58_s16, %s124_s0 }
   0x4   :  { %p64_p2 = pnand %p62_p1, %p59_p0 }
   0x6   :  { %67 = shalt.err (!%p64_p2)
}
   0x7   :  { %s68_s21 = scalar_lea.vmem %s17_s13, 128  ;;  %p73_p4 = scmp.lt.s32.totalorder %s17_s13, %s17_s13 }
   0x8   :  { %p69_p3 = scmp.ne.s32.totalorder %s17_s13, %s68_s21  ;;  %p74_p5 = scmp.lt.s32.totalorder %s68_s21, %s68_s21 }
   0xa   :  { %p75_p6 = por %p74_p5, %p73_p4 }
   0xc   :  { %p76_p7 = pnand %p75_p6, %p69_p3 }
   0xe   :  { %79 = shalt.err (!%p76_p7)
}
   0xf   :  { %19 = dma.hbm_to_vmem [thread:$0]  %s124_s0, 128, %s17_s13, [#allocation4]  }
  0x10   :  { %80 = dma.done.wait [#allocation4], 128  }
  0x11   :  { %81 = vsyncadd [#allocation4], 4294967168  ;;  %v27_v0 = vld [vmem:[#allocation3] sm:$0xff]  ;;  %vm36_vm0 = vcmask 261120   ;;  %v41_v4 = vstv %s126_s2  ;;  %vm47_vm1 = vcmask 7168  }
  0x12   :  { %v54_v1 = vld [vmem:[%s125_s1] ss:$0 sm:$0xff] }
  0x13   :  { %v35_v2 = vmul.f32 %v54_v1, %v27_v0 }
  0x15   :  { %v37_v3 = vsel %vm36_vm0, %v35_v2, 0.0 }
  0x16   :  { %38 = vadd.xlane.f32.xlu0 %v37_v3 }
  0xa3   :  { %v39_v5 = vpop.xlane.xlu0 %38 }
  0xa4   :  { %v42_v6 = vadd.f32 %v41_v4, %v39_v5 }
  0xa6   :  { %v43_v7 = vmul.f32 0.5, %v42_v6 }
  0xa8   :  { %56 = vtanh.f32 %v43_v7 }
  0xb2   :  { %v57_v8 = vpop.eup %56 }
  0xb3   :  { %v45_v9 = vadd.f32 1.0, %v57_v8 }
  0xb5   :  { %v46_v10 = vmul.f32 0.5, %v45_v9 }
  0xb7   :  { %48 = vst.msk [vmem:[%s127_s3] sm:$0xff] %vm47_vm1, %v46_v10 }
  0xb8   :  { %53 = vsyncpa [#allocation4], 1 }

</bundles_post_ra>
